<compile_context>
chip_gen: v7x
topology: tpu7x:2x2x1
jax: 0.10.0
libtpu: 0.0.40
codegen_flags: <defaults>
</compile_context>

<pallas_src>
import functools

import jax
import jax.numpy as jnp
from jax.experimental import pallas as pl
from jax.experimental.pallas import tpu as pltpu


# ---------------- fused Pallas kernel ----------------

def _bottleneck_kernel(x_ref, w1_ref, w2c_ref, w3_ref,
                       b1_ref, bc_ref, s23_ref, b3_ref, o_ref, *, W):
    """One image per grid step, (C, H*W) layout (channels on sublanes, pixels on lanes)."""
    cdtype = w1_ref.dtype
    width = w1_ref.shape[0]
    HW = x_ref.shape[1]
    PAD = W + 1

    # conv1 (1x1) + bn1 + relu : out0 = relu(W1' @ x + b1)
    xb = x_ref[...].astype(cdtype)
    out0 = jnp.dot(w1_ref[...], xb, preferred_element_type=jnp.float32)
    out0 = jnp.maximum(out0 + b1_ref[...], 0.0)
    out0b = out0.astype(cdtype)                                   # (width, HW)

    # 3x3 taps of out0 (stride 1, zero padding 1) as lane shifts of the (width, HW) slab:
    # tap_k[:, p] = out0[:, p + k] with k = dy*W + dx.  Vertically out-of-image pixels fall
    # into the zero pad columns; horizontal wrap across image rows is masked per output pixel.
    zpad = jnp.zeros((width, PAD), cdtype)
    padded = jnp.concatenate([zpad, out0b, zpad], axis=1)

    wcol = jax.lax.broadcasted_iota(jnp.int32, (1, HW), 1) % W
    mask_l = wcol > 0          # left neighbour exists  (dx = -1)
    mask_r = wcol < (W - 1)    # right neighbour exists (dx = +1)

    taps = []
    for dy in (-1, 0, 1):
        for dx in (-1, 0, 1):
            k = dy * W + dx
            tap = padded[:, PAD + k:PAD + k + HW]
            if dx == -1:
                tap = jnp.where(mask_l, tap, jnp.zeros_like(tap))
            elif dx == 1:
                tap = jnp.where(mask_r, tap, jnp.zeros_like(tap))
            taps.append(tap)
    im2col = jnp.concatenate(taps, axis=0)                        # (9*width, HW)

    # conv2(3x3)+bn2 and conv22(3x3)+bn22 fused into ONE matmul: K = 9*width.
    acc = jnp.dot(w2c_ref[...], im2col, preferred_element_type=jnp.float32)  # (2*width, HW)

    # bn2/bn22 biases + relu on both branches at once, then the 3-way sum (bn23 scale only;
    # its bias is folded into b3).
    branches = jnp.maximum(acc + bc_ref[...], 0.0)
    mid = branches[:width, :] + branches[width:, :] + out0b.astype(jnp.float32) * s23_ref[...]

    # conv3 (1x1) + bn3 (scale folded into W3', bias includes bn23's bias) + residual + relu.
    y = jnp.dot(w3_ref[...], mid.astype(cdtype), preferred_element_type=jnp.float32)
    o_ref[...] = jnp.maximum(y + b3_ref[...] + x_ref[...], 0.0)


# ---------------- wrapper ----------------

def bottleneck_forward(x_nchw, prep):
    N, Cin, H, W = x_nchw.shape
    width = prep["w1_t"].shape[0]
    Cout = prep["w3_t"].shape[0]
    assert Cout == Cin, "no-downsample residual path requires inplanes == planes * 4"
    HW = H * W
    x3 = x_nchw.reshape(N, Cin, HW)   # NCHW -> (N, C, H*W): free reshape, no transpose needed

    kernel = functools.partial(_bottleneck_kernel, W=W)
    out = pl.pallas_call(
        kernel,
        out_shape=jax.ShapeDtypeStruct((N, Cout, HW), jnp.float32),
        grid=(N,),
        in_specs=[
            pl.BlockSpec((None, Cin, HW), lambda n: (n, 0, 0)),        # x (one image)
            pl.BlockSpec((width, Cin), lambda n: (0, 0)),              # W1'  (bn1 folded)
            pl.BlockSpec((2 * width, 9 * width), lambda n: (0, 0)),    # [W2'; W22'] im2col weight
            pl.BlockSpec((Cout, width), lambda n: (0, 0)),             # W3'  (bn3 folded)
            pl.BlockSpec((width, 1), lambda n: (0, 0)),                # b1
            pl.BlockSpec((2 * width, 1), lambda n: (0, 0)),            # [b2; b22]
            pl.BlockSpec((width, 1), lambda n: (0, 0)),                # s23
            pl.BlockSpec((Cout, 1), lambda n: (0, 0)),                 # b3 + b23 @ W3'
        ],
        out_specs=pl.BlockSpec((None, Cout, HW), lambda n: (n, 0, 0)),
        compiler_params=pltpu.CompilerParams(
            dimension_semantics=("parallel",),
            vmem_limit_bytes=48 * 1024 * 1024,   # < 64 MiB physical on v7x, headroom everywhere
        ),
    )(x3, prep["w1_t"], prep["w2c_t"], prep["w3_t"],
      prep["b1"], prep["bc"], prep["s23"], prep["b3"])
    return out.reshape(N, Cout, H, W)


# ---------------- parameter folding / preparation ----------------

def fold_bn(gamma, beta, mean, var, eps=1e-5):
    scale = gamma / jnp.sqrt(var + eps)
    bias = beta - mean * scale
    return scale, bias


def prepare_params(raw, compute_dtype=jnp.bfloat16):
    """Fold BN scales into conv weights, fold bn23's bias through conv3, and transpose into
    the (out_ch, in_ch) / column-bias layout the fused kernel consumes."""
    w1 = raw["w1"][0, 0] * raw["s1"][None, :]                    # (Cin, width)
    w2 = raw["w2"] * raw["s2"][None, None, None, :]              # (3,3,width,width) HWIO
    w22 = raw["w22"] * raw["s22"][None, None, None, :]
    w3 = raw["w3"][0, 0] * raw["s3"][None, :]                    # (width, Cout)

    width = w1.shape[1]
    w2_t = jnp.transpose(w2.reshape(9, width, width), (0, 2, 1))    # (9, out, in)
    w22_t = jnp.transpose(w22.reshape(9, width, width), (0, 2, 1))
    w2c = jnp.concatenate([w2_t, w22_t], axis=1)                    # (9, 2*width, width)
    # -> single im2col weight: rows = [conv2 out; conv22 out], cols = tap-major (t*width + cin)
    w2c_t = jnp.transpose(w2c, (1, 0, 2)).reshape(2 * width, 9 * width)

    b3_eff = raw["b3"] + raw["b23"] @ w3                            # bn23 bias folded thru conv3

    return dict(
        w1_t=jnp.transpose(w1).astype(compute_dtype),               # (width, Cin)
        w2c_t=w2c_t.astype(compute_dtype),                          # (2*width, 9*width)
        w3_t=jnp.transpose(w3).astype(compute_dtype),               # (Cout, width)
        b1=raw["b1"][:, None].astype(jnp.float32),
        bc=jnp.concatenate([raw["b2"], raw["b22"]])[:, None].astype(jnp.float32),
        s23=raw["s23"][:, None].astype(jnp.float32),
        b3=b3_eff[:, None].astype(jnp.float32),
    )


# ---------------- deterministic parameter init (synthetic, no checkpoint) ----------------

def init_params(key, inplanes, planes, base_width=64, groups=1):
    expansion = 4
    width = int(planes * (base_width / 64.0)) * groups
    cout = planes * expansion
    assert cout == inplanes, "no-downsample residual path requires inplanes == planes * 4"
    keys = jax.random.split(key, 9)

    def conv_w(k, kh, kw, cin, co):
        return jax.random.normal(k, (kh, kw, cin, co), jnp.float32) / jnp.sqrt(kh * kw * cin)

    def bn(k, c):
        k1, k2, k3, k4 = jax.random.split(k, 4)
        gamma = 1.0 + 0.1 * jax.random.normal(k1, (c,), jnp.float32)
        beta = 0.1 * jax.random.normal(k2, (c,), jnp.float32)
        mean = 0.1 * jax.random.normal(k3, (c,), jnp.float32)
        var = jax.random.uniform(k4, (c,), jnp.float32, minval=0.5, maxval=1.5)
        return fold_bn(gamma, beta, mean, var)

    raw = dict(
        w1=conv_w(keys[0], 1, 1, inplanes, width),
        w2=conv_w(keys[1], 3, 3, width, width),
        w22=conv_w(keys[2], 3, 3, width, width),
        w3=conv_w(keys[3], 1, 1, width, cout),
    )
    for name, k in (("1", keys[4]), ("2", keys[5]), ("22", keys[6]), ("23", keys[7]), ("3", keys[8])):
        c = cout if name == "3" else width
        s, b = bn(k, c)
        raw["s" + name], raw["b" + name] = s, b
    return raw


# ---------------- pure-JAX references for validation ----------------

def reference_forward(x_nchw, raw):
    """Module semantics (eval-mode BN), unfolded weights, f32 HIGHEST precision."""
    x = jnp.transpose(x_nchw, (0, 2, 3, 1))
    dn = ("NHWC", "HWIO", "NHWC")

    def conv(a, w, pad):
        return jax.lax.conv_general_dilated(a, w, (1, 1), pad, dimension_numbers=dn,
                                            precision=jax.lax.Precision.HIGHEST)

    relu = lambda t: jnp.maximum(t, 0.0)
    out0 = relu(conv(x, raw["w1"], "VALID") * raw["s1"] + raw["b1"])
    out = relu(conv(out0, raw["w2"], [(1, 1), (1, 1)]) * raw["s2"] + raw["b2"])
    out1 = relu(conv(out0, raw["w22"], [(1, 1), (1, 1)]) * raw["s22"] + raw["b22"])
    out2 = out0 * raw["s23"] + raw["b23"]
    out = out + out1 + out2
    out = conv(out, raw["w3"], "VALID") * raw["s3"] + raw["b3"]
    out = relu(out + x)
    return jnp.transpose(out, (0, 3, 1, 2))


def matched_reference(x_nchw, prep):
    """Same folded weights and the same rounding points the kernel uses (tight check)."""
    cdtype = prep["w1_t"].dtype
    width = prep["w1_t"].shape[0]

    w1 = jnp.transpose(prep["w1_t"]).astype(jnp.float32)[None, None]        # (1,1,Cin,width)
    w2c = prep["w2c_t"].astype(jnp.float32).reshape(2 * width, 9, width)    # (out2, tap, in)
    w2c = jnp.transpose(w2c, (1, 2, 0))                                     # (9, in, out2)
    w2 = w2c[:, :, :width].reshape(3, 3, width, width)
    w22 = w2c[:, :, width:].reshape(3, 3, width, width)
    w3 = jnp.transpose(prep["w3_t"]).astype(jnp.float32)[None, None]        # (1,1,width,Cout)
    b1, b2, b22 = prep["b1"][:, 0], prep["bc"][:width, 0], prep["bc"][width:, 0]
    s23, b3 = prep["s23"][:, 0], prep["b3"][:, 0]

    x = jnp.transpose(x_nchw, (0, 2, 3, 1))
    dn = ("NHWC", "HWIO", "NHWC")

    def conv(a, w, pad):
        return jax.lax.conv_general_dilated(a, w, (1, 1), pad, dimension_numbers=dn,
                                            precision=jax.lax.Precision.HIGHEST)

    relu = lambda t: jnp.maximum(t, 0.0)
    q = lambda t: t.astype(cdtype).astype(jnp.float32)   # kernel's rounding points

    out0 = relu(conv(q(x), w1, "VALID") + b1)
    o0 = q(out0)
    t2 = relu(conv(o0, w2, [(1, 1), (1, 1)]) + b2)
    t22 = relu(conv(o0, w22, [(1, 1), (1, 1)]) + b22)
    mid = t2 + t22 + o0 * s23
    y = conv(q(mid), w3, "VALID") + b3
    out = relu(y + x)
    return jnp.transpose(out, (0, 3, 1, 2))


if __name__ == "__main__":
    key = jax.random.PRNGKey(0)
    kx, kp = jax.random.split(key)
    N, inplanes, planes, H, W = 2, 64, 16, 16, 16   # width = 16, out channels = 64
    x = jax.random.normal(kx, (N, inplanes, H, W), jnp.float32)
    raw = init_params(kp, inplanes, planes)

    # Performance configuration: bf16 matmuls, f32 accumulation / elementwise tail.
    prep_bf16 = prepare_params(raw, jnp.bfloat16)
    y = jax.block_until_ready(jax.jit(bottleneck_forward)(x, prep_bf16))

    # --- validation ---
    y_spec = reference_forward(x, raw)                                # module semantics, f32
    y_match = matched_reference(x, prep_bf16)                         # same precision as kernel
    y_fold = matched_reference(x, prepare_params(raw, jnp.float32))   # folding check (pure XLA)

    err_fold = float(jnp.max(jnp.abs(y_fold - y_spec)))   # BN/weight folding is exact in f32
    err_algo = float(jnp.max(jnp.abs(y - y_match)))       # kernel vs same-precision conv ref
    err_e2e = float(jnp.max(jnp.abs(y - y_spec)))         # end-to-end bf16 approximation
    tol_e2e = 5e-2 * (1.0 + float(jnp.max(jnp.abs(y_spec))))

    assert err_fold < 1e-4, f"BN/weight folding mismatch: {err_fold}"
    assert err_algo < 5e-3, f"kernel vs matched reference: {err_algo}"
    assert err_e2e < tol_e2e, f"bf16 kernel vs module reference: {err_e2e} (tol {tol_e2e})"
    print("KERNEL_OK")
</pallas_src>

<mosaic_0001>
module attributes {stable_mosaic.version = 11 : i64} {
  func.func @_bottleneck_kernel(%arg0: i32, %arg1: memref<1x64x256xf32, #tpu.memory_space<vmem>>, %arg2: memref<16x64xbf16, #tpu.memory_space<vmem>>, %arg3: memref<32x144xbf16, #tpu.memory_space<vmem>>, %arg4: memref<64x16xbf16, #tpu.memory_space<vmem>>, %arg5: memref<16x1xf32, #tpu.memory_space<vmem>>, %arg6: memref<32x1xf32, #tpu.memory_space<vmem>>, %arg7: memref<16x1xf32, #tpu.memory_space<vmem>>, %arg8: memref<64x1xf32, #tpu.memory_space<vmem>>, %arg9: memref<1x64x256xf32, #tpu.memory_space<vmem>>) attributes {dimension_semantics = [#tpu.dimension_semantics<parallel>], iteration_bounds = array<i64: 2>, scalar_prefetch = 0 : i64, scratch_operands = 0 : i64, tpu.core_type = #tpu.core_type<tc>, window_params = [{transform_indices = @transform_0, window_bounds = array<i64: 1, 64, 256>}, {pipeline_mode = #tpu.pipeline_mode<synchronous>, transform_indices = @transform_1, window_bounds = array<i64: 16, 64>}, {pipeline_mode = #tpu.pipeline_mode<synchronous>, transform_indices = @transform_2, window_bounds = array<i64: 32, 144>}, {pipeline_mode = #tpu.pipeline_mode<synchronous>, transform_indices = @transform_3, window_bounds = array<i64: 64, 16>}, {pipeline_mode = #tpu.pipeline_mode<synchronous>, transform_indices = @transform_4, window_bounds = array<i64: 16, 1>}, {pipeline_mode = #tpu.pipeline_mode<synchronous>, transform_indices = @transform_5, window_bounds = array<i64: 32, 1>}, {pipeline_mode = #tpu.pipeline_mode<synchronous>, transform_indices = @transform_6, window_bounds = array<i64: 16, 1>}, {pipeline_mode = #tpu.pipeline_mode<synchronous>, transform_indices = @transform_7, window_bounds = array<i64: 64, 1>}, {transform_indices = @transform_8, window_bounds = array<i64: 1, 64, 256>}]} {
    %c0 = arith.constant 0 : index
    %c0_0 = arith.constant 0 : index
    %c0_1 = arith.constant 0 : index
    %0 = vector.load %arg1[%c0, %c0_0, %c0_1] : memref<1x64x256xf32, #tpu.memory_space<vmem>>, vector<1x64x256xf32>
    %1 = vector.shape_cast %0 : vector<1x64x256xf32> to vector<64x256xf32>
    %2 = arith.truncf %1 : vector<64x256xf32> to vector<64x256xbf16>
    %c0_2 = arith.constant 0 : index
    %c0_3 = arith.constant 0 : index
    %3 = vector.load %arg2[%c0_2, %c0_3] : memref<16x64xbf16, #tpu.memory_space<vmem>>, vector<16x64xbf16>
    %cst = arith.constant dense<0.000000e+00> : vector<16x256xf32>
    %4 = tpu.matmul %3, %2, %cst {dimension_numbers = #tpu.dot_dimension_numbers<[1], [0], [0], [1], [0, 0, 1, 1], [], []>} : vector<16x64xbf16>, vector<64x256xbf16>, vector<16x256xf32> -> vector<16x256xf32>
    %c0_4 = arith.constant 0 : index
    %c0_5 = arith.constant 0 : index
    %5 = vector.load %arg5[%c0_4, %c0_5] : memref<16x1xf32, #tpu.memory_space<vmem>>, vector<16x1xf32>
    %6 = vector.broadcast %5 : vector<16x1xf32> to vector<16x256xf32>
    %7 = arith.addf %4, %6 : vector<16x256xf32>
    %cst_6 = arith.constant 0.000000e+00 : f32
    %8 = vector.broadcast %cst_6 : f32 to vector<16x256xf32>
    %9 = arith.maximumf %7, %8 : vector<16x256xf32>
    %10 = arith.truncf %9 : vector<16x256xf32> to vector<16x256xbf16>
    %cst_7 = arith.constant 0.000000e+00 : bf16
    %11 = vector.broadcast %cst_7 : bf16 to vector<16x17xbf16>
    %12 = tpu.concatenate %11, %10, %11 in 1 : vector<16x17xbf16>, vector<16x256xbf16>, vector<16x17xbf16> -> vector<16x290xbf16>
    %13 = tpu.iota {dimensions = array<i32: 1>} : vector<1x256xi32>
    %c16_i32 = arith.constant 16 : i32
    %c0_i32 = arith.constant 0 : i32
    %14 = arith.cmpi eq, %c16_i32, %c0_i32 : i32
    %c1_i32 = arith.constant 1 : i32
    %15 = arith.select %14, %c1_i32, %c16_i32 : i32
    %16 = vector.broadcast %15 : i32 to vector<1x256xi32>
    %17 = arith.remsi %13, %16 : vector<1x256xi32>
    %c0_i32_8 = arith.constant 0 : i32
    %18 = vector.broadcast %c0_i32_8 : i32 to vector<1x256xi32>
    %19 = arith.cmpi ne, %17, %18 : vector<1x256xi32>
    %c0_i32_9 = arith.constant 0 : i32
    %20 = vector.broadcast %c0_i32_9 : i32 to vector<1x256xi32>
    %21 = arith.cmpi slt, %17, %20 : vector<1x256xi32>
    %c0_i32_10 = arith.constant 0 : i32
    %22 = arith.cmpi slt, %15, %c0_i32_10 : i32
    %23 = vector.broadcast %22 : i1 to vector<1x256xi1>
    %24 = vector.broadcast %23 : vector<1x256xi1> to vector<1x256xi1>
    %25 = arith.xori %21, %24 : vector<1x256xi1>
    %26 = arith.andi %25, %19 : vector<1x256xi1>
    %27 = vector.broadcast %15 : i32 to vector<1x256xi32>
    %28 = arith.addi %17, %27 : vector<1x256xi32>
    %29 = arith.select %26, %28, %17 : vector<1x256xi1>, vector<1x256xi32>
    %c0_i32_11 = arith.constant 0 : i32
    %30 = vector.broadcast %c0_i32_11 : i32 to vector<1x256xi32>
    %31 = arith.cmpi sgt, %29, %30 : vector<1x256xi32>
    %c15_i32 = arith.constant 15 : i32
    %32 = vector.broadcast %c15_i32 : i32 to vector<1x256xi32>
    %33 = arith.cmpi slt, %29, %32 : vector<1x256xi32>
    %34 = vector.extract_strided_slice %12 {offsets = [0, 0], sizes = [16, 256], strides = [1, 1]} : vector<16x290xbf16> to vector<16x256xbf16>
    %cst_12 = arith.constant 0.000000e+00 : bf16
    %35 = vector.broadcast %cst_12 : bf16 to vector<16x256xbf16>
    %36 = vector.shape_cast %31 : vector<1x256xi1> to vector<1x256xi1>
    %37 = vector.broadcast %36 : vector<1x256xi1> to vector<16x256xi1>
    %38 = arith.select %37, %34, %35 : vector<16x256xi1>, vector<16x256xbf16>
    %39 = vector.extract_strided_slice %12 {offsets = [0, 1], sizes = [16, 256], strides = [1, 1]} : vector<16x290xbf16> to vector<16x256xbf16>
    %40 = vector.extract_strided_slice %12 {offsets = [0, 2], sizes = [16, 256], strides = [1, 1]} : vector<16x290xbf16> to vector<16x256xbf16>
    %cst_13 = arith.constant 0.000000e+00 : bf16
    %41 = vector.broadcast %cst_13 : bf16 to vector<16x256xbf16>
    %42 = vector.shape_cast %33 : vector<1x256xi1> to vector<1x256xi1>
    %43 = vector.broadcast %42 : vector<1x256xi1> to vector<16x256xi1>
    %44 = arith.select %43, %40, %41 : vector<16x256xi1>, vector<16x256xbf16>
    %45 = vector.extract_strided_slice %12 {offsets = [0, 16], sizes = [16, 256], strides = [1, 1]} : vector<16x290xbf16> to vector<16x256xbf16>
    %cst_14 = arith.constant 0.000000e+00 : bf16
    %46 = vector.broadcast %cst_14 : bf16 to vector<16x256xbf16>
    %47 = vector.shape_cast %31 : vector<1x256xi1> to vector<1x256xi1>
    %48 = vector.broadcast %47 : vector<1x256xi1> to vector<16x256xi1>
    %49 = arith.select %48, %45, %46 : vector<16x256xi1>, vector<16x256xbf16>
    %50 = vector.extract_strided_slice %12 {offsets = [0, 17], sizes = [16, 256], strides = [1, 1]} : vector<16x290xbf16> to vector<16x256xbf16>
    %51 = vector.extract_strided_slice %12 {offsets = [0, 18], sizes = [16, 256], strides = [1, 1]} : vector<16x290xbf16> to vector<16x256xbf16>
    %cst_15 = arith.constant 0.000000e+00 : bf16
    %52 = vector.broadcast %cst_15 : bf16 to vector<16x256xbf16>
    %53 = vector.shape_cast %33 : vector<1x256xi1> to vector<1x256xi1>
    %54 = vector.broadcast %53 : vector<1x256xi1> to vector<16x256xi1>
    %55 = arith.select %54, %51, %52 : vector<16x256xi1>, vector<16x256xbf16>
    %56 = vector.extract_strided_slice %12 {offsets = [0, 32], sizes = [16, 256], strides = [1, 1]} : vector<16x290xbf16> to vector<16x256xbf16>
    %cst_16 = arith.constant 0.000000e+00 : bf16
    %57 = vector.broadcast %cst_16 : bf16 to vector<16x256xbf16>
    %58 = vector.shape_cast %31 : vector<1x256xi1> to vector<1x256xi1>
    %59 = vector.broadcast %58 : vector<1x256xi1> to vector<16x256xi1>
    %60 = arith.select %59, %56, %57 : vector<16x256xi1>, vector<16x256xbf16>
    %61 = vector.extract_strided_slice %12 {offsets = [0, 33], sizes = [16, 256], strides = [1, 1]} : vector<16x290xbf16> to vector<16x256xbf16>
    %62 = vector.extract_strided_slice %12 {offsets = [0, 34], sizes = [16, 256], strides = [1, 1]} : vector<16x290xbf16> to vector<16x256xbf16>
    %cst_17 = arith.constant 0.000000e+00 : bf16
    %63 = vector.broadcast %cst_17 : bf16 to vector<16x256xbf16>
    %64 = vector.shape_cast %33 : vector<1x256xi1> to vector<1x256xi1>
    %65 = vector.broadcast %64 : vector<1x256xi1> to vector<16x256xi1>
    %66 = arith.select %65, %62, %63 : vector<16x256xi1>, vector<16x256xbf16>
    %67 = tpu.concatenate %38, %39, %44, %49, %50, %55, %60, %61, %66 in 0 : vector<16x256xbf16>, vector<16x256xbf16>, vector<16x256xbf16>, vector<16x256xbf16>, vector<16x256xbf16>, vector<16x256xbf16>, vector<16x256xbf16>, vector<16x256xbf16>, vector<16x256xbf16> -> vector<144x256xbf16>
    %c0_18 = arith.constant 0 : index
    %c0_19 = arith.constant 0 : index
    %68 = vector.load %arg3[%c0_18, %c0_19] : memref<32x144xbf16, #tpu.memory_space<vmem>>, vector<32x144xbf16>
    %cst_20 = arith.constant dense<0.000000e+00> : vector<32x256xf32>
    %69 = tpu.matmul %68, %67, %cst_20 {dimension_numbers = #tpu.dot_dimension_numbers<[1], [0], [0], [1], [0, 0, 1, 1], [], []>} : vector<32x144xbf16>, vector<144x256xbf16>, vector<32x256xf32> -> vector<32x256xf32>
    %c0_21 = arith.constant 0 : index
    %c0_22 = arith.constant 0 : index
    %70 = vector.load %arg6[%c0_21, %c0_22] : memref<32x1xf32, #tpu.memory_space<vmem>>, vector<32x1xf32>
    %71 = vector.broadcast %70 : vector<32x1xf32> to vector<32x256xf32>
    %72 = arith.addf %69, %71 : vector<32x256xf32>
    %cst_23 = arith.constant 0.000000e+00 : f32
    %73 = vector.broadcast %cst_23 : f32 to vector<32x256xf32>
    %74 = arith.maximumf %72, %73 : vector<32x256xf32>
    %75 = vector.extract_strided_slice %74 {offsets = [0, 0], sizes = [16, 256], strides = [1, 1]} : vector<32x256xf32> to vector<16x256xf32>
    %76 = vector.extract_strided_slice %74 {offsets = [16, 0], sizes = [16, 256], strides = [1, 1]} : vector<32x256xf32> to vector<16x256xf32>
    %77 = arith.addf %75, %76 : vector<16x256xf32>
    %78 = arith.extf %10 : vector<16x256xbf16> to vector<16x256xf32>
    %c0_24 = arith.constant 0 : index
    %c0_25 = arith.constant 0 : index
    %79 = vector.load %arg7[%c0_24, %c0_25] : memref<16x1xf32, #tpu.memory_space<vmem>>, vector<16x1xf32>
    %80 = vector.broadcast %79 : vector<16x1xf32> to vector<16x256xf32>
    %81 = arith.mulf %78, %80 : vector<16x256xf32>
    %82 = arith.addf %77, %81 : vector<16x256xf32>
    %c0_26 = arith.constant 0 : index
    %c0_27 = arith.constant 0 : index
    %83 = vector.load %arg4[%c0_26, %c0_27] : memref<64x16xbf16, #tpu.memory_space<vmem>>, vector<64x16xbf16>
    %84 = arith.truncf %82 : vector<16x256xf32> to vector<16x256xbf16>
    %cst_28 = arith.constant dense<0.000000e+00> : vector<64x256xf32>
    %85 = tpu.matmul %83, %84, %cst_28 {dimension_numbers = #tpu.dot_dimension_numbers<[1], [0], [0], [1], [0, 0, 1, 1], [], []>} : vector<64x16xbf16>, vector<16x256xbf16>, vector<64x256xf32> -> vector<64x256xf32>
    %c0_29 = arith.constant 0 : index
    %c0_30 = arith.constant 0 : index
    %86 = vector.load %arg8[%c0_29, %c0_30] : memref<64x1xf32, #tpu.memory_space<vmem>>, vector<64x1xf32>
    %87 = vector.broadcast %86 : vector<64x1xf32> to vector<64x256xf32>
    %88 = arith.addf %85, %87 : vector<64x256xf32>
    %c0_31 = arith.constant 0 : index
    %c0_32 = arith.constant 0 : index
    %c0_33 = arith.constant 0 : index
    %89 = vector.load %arg1[%c0_31, %c0_32, %c0_33] : memref<1x64x256xf32, #tpu.memory_space<vmem>>, vector<1x64x256xf32>
    %90 = vector.shape_cast %89 : vector<1x64x256xf32> to vector<64x256xf32>
    %91 = arith.addf %88, %90 : vector<64x256xf32>
    %cst_34 = arith.constant 0.000000e+00 : f32
    %92 = vector.broadcast %cst_34 : f32 to vector<64x256xf32>
    %93 = arith.maximumf %91, %92 : vector<64x256xf32>
    %c0_35 = arith.constant 0 : index
    %c0_36 = arith.constant 0 : index
    %c0_37 = arith.constant 0 : index
    %94 = vector.load %arg9[%c0_35, %c0_36, %c0_37] : memref<1x64x256xf32, #tpu.memory_space<vmem>>, vector<1x64x256xf32>
    %95 = vector.shape_cast %94 : vector<1x64x256xf32> to vector<64x256xf32>
    %96 = vector.shape_cast %93 : vector<64x256xf32> to vector<1x64x256xf32>
    tpu.vector_store %arg9[%c0_35, %c0_36, %c0_37], %96 {strides = array<i32>} : memref<1x64x256xf32, #tpu.memory_space<vmem>>, vector<1x64x256xf32>,
    return
  }
  func.func @transform_0(%arg0: i32) -> (i32, i32, i32) {
    %c0_i32 = arith.constant 0 : i32
    %c0_i32_0 = arith.constant 0 : i32
    %c0_i32_1 = arith.constant 0 : i32
    return %arg0, %c0_i32, %c0_i32_0 : i32, i32, i32
  }
  func.func @transform_1(%arg0: i32) -> (i32, i32) {
    %c0_i32 = arith.constant 0 : i32
    %c0_i32_0 = arith.constant 0 : i32
    %c0_i32_1 = arith.constant 0 : i32
    return %c0_i32, %c0_i32_0 : i32, i32
  }
  func.func @transform_2(%arg0: i32) -> (i32, i32) {
    %c0_i32 = arith.constant 0 : i32
    %c0_i32_0 = arith.constant 0 : i32
    %c0_i32_1 = arith.constant 0 : i32
    return %c0_i32, %c0_i32_0 : i32, i32
  }
  func.func @transform_3(%arg0: i32) -> (i32, i32) {
    %c0_i32 = arith.constant 0 : i32
    %c0_i32_0 = arith.constant 0 : i32
    %c0_i32_1 = arith.constant 0 : i32
    return %c0_i32, %c0_i32_0 : i32, i32
  }
  func.func @transform_4(%arg0: i32) -> (i32, i32) {
    %c0_i32 = arith.constant 0 : i32
    %c0_i32_0 = arith.constant 0 : i32
    %c0_i32_1 = arith.constant 0 : i32
    return %c0_i32, %c0_i32_0 : i32, i32
  }
  func.func @transform_5(%arg0: i32) -> (i32, i32) {
    %c0_i32 = arith.constant 0 : i32
    %c0_i32_0 = arith.constant 0 : i32
    %c0_i32_1 = arith.constant 0 : i32
    return %c0_i32, %c0_i32_0 : i32, i32
  }
  func.func @transform_6(%arg0: i32) -> (i32, i32) {
    %c0_i32 = arith.constant 0 : i32
    %c0_i32_0 = arith.constant 0 : i32
    %c0_i32_1 = arith.constant 0 : i32
    return %c0_i32, %c0_i32_0 : i32, i32
  }
  func.func @transform_7(%arg0: i32) -> (i32, i32) {
    %c0_i32 = arith.constant 0 : i32
    %c0_i32_0 = arith.constant 0 : i32
    %c0_i32_1 = arith.constant 0 : i32
    return %c0_i32, %c0_i32_0 : i32, i32
  }
  func.func @transform_8(%arg0: i32) -> (i32, i32, i32) {
    %c0_i32 = arith.constant 0 : i32
    %c0_i32_0 = arith.constant 0 : i32
    %c0_i32_1 = arith.constant 0 : i32
    return %arg0, %c0_i32, %c0_i32_0 : i32, i32, i32
  }
}

</mosaic_0001>

<bundles_post_ra>
// kernel: bottleneck_forward.1
= control target key start
LH: loop header
LB: loop body
LE: loop exit
PB: predicated region body
PF: predicated region fallthrough
CT: control target
= control target key end

     0   :  { %s1192_s27 = smov 0   ;;  %s1485_s0 = inlined_call_operand.vmem [shape: f32[2,64,256], index: 0, kind: input, shape index: {}]   ;;  %s1486_s1 = inlined_call_operand.vmem [shape: bf16[16,64], index: 1, kind: input, shape index: {}]   ;;  %s1487_s2 = inlined_call_operand.vmem [shape: bf16[32,144], index: 2, kind: input, shape index: {}]   ;;  %s1488_s3 = inlined_call_operand.vmem [shape: bf16[64,16], index: 3, kind: input, shape index: {}]   ;;  %s1489_s4 = inlined_call_operand.vmem [shape: f32[16,1], index: 4, kind: input, shape index: {}]   ;;  %s1490_s5 = inlined_call_operand.vmem [shape: f32[32,1], index: 5, kind: input, shape index: {}]   ;;  %s1491_s6 = inlined_call_operand.vmem [shape: f32[16,1], index: 6, kind: input, shape index: {}]   ;;  %s1492_s7 = inlined_call_operand.vmem [shape: f32[64,1], index: 7, kind: input, shape index: {}]   ;;  %s1493_s8 = inlined_call_operand.vmem [shape: f32[2,64,256], index: 8, kind: output, shape index: {}]  }
   0x1 LB: > { %s1058_s28 = sadd.s32 4294967295, %s1130_s27   ;;  %p1062_p0 = scmp.ge.s32.totalorder %s1130_s27, 1  ;;  %s1130_s27 = sphi %s1192_s27, %s18_s27  }
   0x2   : > { %p262_p1 = scmp.lt.s32.totalorder %s1130_s27, 3 }
   0x4   : > { %p263_p2 = pnand %p1062_p0, %p262_p1 }
   0x5   : > { %p296_p3 = scmp.lt.s32.totalorder (!%p263_p2), %s1058_s28, 1  ;;  %v422_v0 = vlaneseq (!%p263_p2)  ;;  %v1132_v1 = vmov (!%p263_p2), 0   ;;  %v335_v2 = vld [vmem:[%s1489_s4] sm:$0xff] (!%p263_p2)  ;;  %v336_v3 = vld [vmem:[%s1489_s4 + $0x8] sm:$0xff] (!%p263_p2)  ;;  %s1133_s15 = smov (!%p263_p2), 2   ;;  %vm352_vm6 = vcmask (!%p263_p2), 523264  }
   0x6   : > { %266 = sbr.rel (%p263_p2) target bundleno = 1018 (0x3fa), region = 52  ;;  %388 = vmatprep.mubr.bf16.mxu0 (!%p263_p2), %v1132_v1  ;;  %1111 = vset.pattern.permute.xlu0 (!%p263_p2), %v1132_v1  ;;  %s1134_s16 = smov (!%p263_p2), 16   ;;  %v1113_v40 = vld [vmem:[%s1486_s1] sm:$0xff] (!%p263_p2)   ;;  %vm411_vm7 = vcmask (!%p263_p2), 138240   ;;  %vm489_vm12 = vcmask (!%p263_p2), 15360   ;;  %vm501_vm15 = vcmask (!%p263_p2), 130048  }
   0x7   : > { %339 = vperm.xlu0 (!%p263_p2), %1111, %v335_v2   ;;  %v423_v4 = vand.u32 (!%p263_p2), 127, %v422_v0  ;;  %1112 = vset.pattern.permute.xlu1 (!%p263_p2), %v1132_v1  ;;  %v1212_v7 = vshrl.u32 (!%p263_p2), %v422_v0, 7  ;;  %s1135_s19 = smov (!%p263_p2), 18   ;;  %s1136_s20 = smov (!%p263_p2), 32  }
   0x8   : > { %s1137_s21 = smov (!%p263_p2), 34   ;;  %s1138_s22 = smov (!%p263_p2), 17  }
   0x9   : > { %v424_v5 = vadd.s32 (!%p263_p2), 128, %v423_v4  ;;  %v429_v6 = vand.u32 (!%p263_p2), 15, %v423_v4  ;;  %v461_v24 = vsub.s32 (!%p263_p2), 0, %v1212_v7  ;;  %v465_v57 = vsub.s32 (!%p263_p2), 4, %v1212_v7  ;;  %s1139_s23 = smov (!%p263_p2), 111   ;;  %s1140_s24 = smov (!%p263_p2), 127  }
   0xa   : > { %s1141_s25 = smov (!%p263_p2), 126   ;;  %s1142_s26 = smov (!%p263_p2), 112  }
   0xb   : > { %344 = vperm.xlu0 (!%p263_p2), %1111, %v336_v3   ;;  %v436_v11 = vand.u32 (!%p263_p2), 15, %v424_v5  ;;  %vm1254_vm0 = vcmp.lt.s32.totalorder (!%p263_p2), %v429_v6, 15  ;;  %vm449_vm2 = vcmp.gt.s32.totalorder (!%p263_p2), %v429_v6, 0  ;;  %s1143_s29 = smov (!%p263_p2), 110   ;;  %s1144_s30 = smov (!%p263_p2), 96  }
   0xc   : > { %s1145_s9 = smov (!%p263_p2), 95   ;;  %s1146_s13 = smov (!%p263_p2), 94  }
   0xd   : > { %s1499_s28 = smov (!%p296_p3, %s1058_s28), 1  ;;  %vm1258_vm1 = vcmp.lt.s32.totalorder %v436_v11, 15  ;;  %vm450_vm3 = vcmp.gt.s32.totalorder %v436_v11, 0 }
   0xe   : > { %s1086_s11 = sshll.u32 %s1499_s28, 7  ;;  %vm475_vm4 = vmpackc.low %vm1258_vm1, %vm1254_vm0 }
   0xf   : > { %s1219_s14 = scalar_lea.vmem %s1485_s0, %s1086_s11  ;;  %v476_v31 = vsel %vm475_vm4, 65537, %v1132_v1  ;;  %vm457_vm5 = vmpackc.low %vm450_vm3, %vm449_vm2  ;;  %vm513_vm4 = vcmask 146432  }
  0x10   : > { %v1222_v8 = vld [vmem:[%s1219_s14 + $0x8] sm:$0xff]  ;;  %v1225_v9 = vld [vmem:[%s1219_s14 + $0x18] sm:$0xff]  ;;  %v1228_v10 = vld [vmem:[%s1219_s14] sm:$0xff]  ;;  %v480_v32 = vrot.slane %v476_v31, %v461_v24  ;;  %v458_v33 = vsel %vm457_vm5, 65537, %v1132_v1  ;;  %v484_v58 = vrot.slane %v476_v31, %v465_v57  ;;  %vm525_vm5 = vcmask 261120  }
  0x11   : > { %v326_v12 = vpack.c.bf16 %v1225_v9, %v1222_v8  ;;  %v1233_v13 = vld [vmem:[%s1219_s14 + $0x10] sm:$0xff]  ;;  %v1236_v14 = vld [vmem:[%s1219_s14 + $0x28] sm:$0xff]  ;;  %v1239_v15 = vld [vmem:[%s1219_s14 + $0x38] sm:$0xff]  ;;  %v1299_v38 = vrot.slane %v458_v33, %v461_v24  ;;  %v466_v59 = vrot.slane %v458_v33, %v465_v57 }
  0x12   : > { %v325_v16 = vpack.c.bf16 %v1233_v13, %v1228_v10  ;;  %v328_v17 = vpack.c.bf16 %v1239_v15, %v1236_v14  ;;  %v1246_v18 = vld [vmem:[%s1219_s14 + $0x20] sm:$0xff]  ;;  %v1249_v19 = vld [vmem:[%s1219_s14 + $0x30] sm:$0xff]  ;;  %v1252_v20 = vld [vmem:[%s1219_s14 + $0x48] sm:$0xff]  ;;  %485 = vrot.lane.b32.xlu0 %v480_v32, %s1133_s15 }
  0x13   : > { %356 = vmatprep.subr.bf16.mxu0 %v326_v12  ;;  %v1263_v23 = vld [vmem:[%s1219_s14 + $0x58] sm:$0xff]  ;;  %v327_v25 = vpack.c.bf16 %v1249_v19, %v1246_v18  ;;  %v1269_v26 = vld [vmem:[%s1219_s14 + $0x40] sm:$0xff]  ;;  %v1272_v27 = vld [vmem:[%s1219_s14 + $0x50] sm:$0xff]  ;;  %vm468_vm8 = vcmp.ne.s16.totalorder %v466_v59, 0  ;;  %vm467_vm9 = vcmp.ne.s16.totalorder %v1299_v38, 0 }
  0x14   : > { %357 = vmatpush1.bf16.msra.mxu0 %v325_v16  ;;  %v330_v28 = vpack.c.bf16 %v1263_v23, %v1252_v20  ;;  %v1277_v29 = vld [vmem:[%s1219_s14 + $0x68] sm:$0xff]  ;;  %v1284_v30 = vld [vmem:[%s1219_s14 + $0x78] sm:$0xff]  ;;  %v329_v34 = vpack.c.bf16 %v1272_v27, %v1269_v26  ;;  %v1293_v36 = vld [vmem:[%s1219_s14 + $0x60] sm:$0xff] }
  0x15   : > { %358 = vmatprep.subr.bf16.mxu0 %v328_v17  ;;  %v332_v35 = vpack.c.bf16 %v1284_v30, %v1277_v29  ;;  %v1296_v37 = vld [vmem:[%s1219_s14 + $0x70] sm:$0xff]  ;;  %v773_v57 = vld [vmem:[%s1491_s6 + $0x8] sm:$0xff] }
  0x16   : > { %v331_v39 = vpack.c.bf16 %v1296_v37, %v1293_v36  ;;  %497 = vrot.lane.b32.xlu0 %v1299_v38, %s1134_s16 }
  0x18   : > { %359 = vmatpush1.bf16.msra.mxu0 %v327_v25 }
  0x19   : > { %360 = vmatprep.subr.bf16.mxu0 %v330_v28 }
  0x1a   : > { %509 = vrot.lane.b32.xlu0 %v480_v32, %s1135_s19 }
  0x1c   : > { %361 = vmatpush1.bf16.msra.mxu0 %v329_v34 }
  0x1d   : > { %362 = vmatprep.subr.bf16.mxu0 %v332_v35 }
  0x1e   : > { %521 = vrot.lane.b32.xlu0 %v1299_v38, %s1136_s20 }
  0x20   : > { %363 = vmatpush1.bf16.msra.mxu0 %v331_v39 }
  0x22   : > { %533 = vrot.lane.b32.xlu0 %v480_v32, %s1137_s21 }
  0x23   : > { %1068 = vmatmul.mubr.msk.bf16.vlgmr.msra.gmra.mrb[0].mxu0 %vm352_vm6, %v1113_v40 }
  0x24   : > { %914 = vmatprep.mubr.bf16.mxu0 %v1132_v1 }
  0x86   : > { %v340_v41 = vpop.permute.xlu0 %339 }
  0x8a   : > { %v345_v45 = vpop.permute.xlu0 %344 }
  0x8e   : > { %v486_v60 = vpop.permute.xlu0 %485 }
  0x8f   : > { %vm491_vm10 = vcmp.ne.s16.totalorder %v486_v60, 0 }
  0x92   : > { %v498_v0 = vpop.permute.xlu0 %497 }
  0x93   : > { %vm503_vm11 = vcmp.ne.s16.totalorder %v498_v0, 0 }
  0x96   : > { %v510_v16 = vpop.permute.xlu0 %509 }
  0x97   : > { %vm515_vm13 = vcmp.ne.s16.totalorder %v510_v16, 0 }
  0x9a   : > { %v522_v25 = vpop.permute.xlu0 %521 }
  0x9b   : > { %vm527_vm2 = vcmp.ne.s16.totalorder %v522_v25, 0 }
  0xf6   : > { %v390_v42 = vpop.f32.mrb[0].mxu0 }
  0xf7   : > { %v391_v43 = vadd.f32 %v390_v42, %v340_v41  ;;  %v392_v44 = vpop.f32.mrb[1].mxu0 }
  0xf8   : > { %v393_v46 = vadd.f32 %v392_v44, %v340_v41  ;;  %v394_v47 = vpop.f32.mrb[2].mxu0 }
  0xf9   : > { %v395_v48 = vadd.f32 %v394_v47, %v345_v45  ;;  %v396_v49 = vpop.f32.mrb[3].mxu0  ;;  %v399_v51 = vmax.f32 %v391_v43, 0.0  ;;  %v534_v43 = vpop.permute.xlu0 %533 }
  0xfa   : > { %v397_v50 = vadd.f32 %v396_v49, %v345_v45  ;;  %v400_v53 = vmax.f32 %v393_v46, 0.0  ;;  %v1116_v45 = vld [vmem:[%s1487_s2 + $0x4] ss:$8 sps:$4 sm:$0xff]  }
  0xfb   : > { %v401_v52 = vmax.f32 %v395_v48, 0.0  ;;  %1074 = vmatprep.mubr.msk.bf16.mxu1 %vm501_vm15, %v1116_v45 }
  0xfc   : > { %v402_v54 = vmax.f32 %v397_v50, 0.0  ;;  %v654_v50 = vld [vmem:[%s1490_s5] sm:$0xff] }
  0xfd   : > { %v1311_v55 = vpack.c.bf16 %v401_v52, %v399_v51  ;;  %v655_v51 = vld [vmem:[%s1490_s5 + $0x8] sm:$0xff]  ;;  %v656_v52 = vld [vmem:[%s1490_s5 + $0x10] sm:$0xff] }
  0xfe   : > { %v1313_v56 = vpack.c.bf16 %v402_v54, %v400_v53  ;;  %v657_v53 = vld [vmem:[%s1490_s5 + $0x18] sm:$0xff]  ;;  %v772_v54 = vld [vmem:[%s1491_s6] sm:$0xff] }
  0xff   : > { %407 = vrot.lane.b32.xlu1 %v1311_v55, %s1138_s22 }
 0x103   : > { %409 = vrot.lane.b32.xlu1 %v1313_v56, %s1138_s22 }
 0x107   : > { %487 = vrot.lane.b32.xlu1 %v484_v58, %s1133_s15 }
 0x10b   : > { %499 = vrot.lane.b32.xlu1 %v466_v59, %s1134_s16 }
 0x10f   : > { %511 = vrot.lane.b32.xlu1 %v484_v58, %s1135_s19 }
 0x113   : > { %523 = vrot.lane.b32.xlu1 %v466_v59, %s1136_s20  ;;  %v804_v59 = vld [vmem:[%s1492_s7 + $0x10] sm:$0xff]  ;;  %s1449_s20 = scalar_lea.vmem %s1493_s8, %s1086_s11 }
 0x117   : > { %535 = vrot.lane.b32.xlu1 %v484_v58, %s1137_s21  ;;  %v802_v58 = vld [vmem:[%s1492_s7] sm:$0xff] }
 0x171   : > { %v408_v61 = vpop.permute.xlu1 %407 }
 0x172   : > { %v1321_v62 = vsel %vm411_vm7, 0, %v408_v61 }
 0x173   : > { %586 = vrot.lane.b32.xlu1 %v1321_v62, %s1139_s23  ;;  %547 = vrot.lane.b32.xlu0 %v1321_v62, %s1140_s24  ;;  %v469_v4 = vsel %vm467_vm9, %v1321_v62, 0  ;;  %v494_v6 = vsel %vm491_vm10, %v1321_v62, 0  ;;  %v506_v7 = vsel %vm503_vm11, %v1321_v62, 0  ;;  %v518_v17 = vsel %vm515_vm13, %v1321_v62, 0 }
 0x174   : > { %v530_v33 = vsel %vm527_vm2, %v1321_v62, 0  ;;  %vm537_vm9 = vcmask 277504   ;;  %vm592_vm2 = vcmask 908288  }
 0x175   : > { %v410_v63 = vpop.permute.xlu1 %409 }
 0x176   : > { %v1327_v2 = vsel %vm411_vm7, %v408_v61, %v410_v63  ;;  %v1329_v3 = vsel %vm411_vm7, %v410_v63, 0  ;;  %v808_v61 = vld [vmem:[%s1492_s7 + $0x30] sm:$0xff]  ;;  %v805_v63 = vld [vmem:[%s1492_s7 + $0x18] sm:$0xff] }
 0x177   : > { %551 = vrot.lane.b32.xlu1 %v1329_v3, %s1140_s24  ;;  %549 = vrot.lane.b32.xlu0 %v1327_v2, %s1140_s24 }
 0x178   : > { %1073 = vmatprep.subr.msk.bf16.mxu1 %vm468_vm8, %v1327_v2 }
 0x179   : > { %704 = vmatpush1.bf16.msra.mxu1 %v469_v4  ;;  %v488_v5 = vpop.permute.xlu1 %487 }
 0x17a   : > { %v490_v11 = vsel %vm489_vm12, %v486_v60, %v488_v5  ;;  %vm493_vm0 = vcmp.ne.s16.totalorder %v488_v5, 0  ;;  %vm539_vm12 = vcmp.ne.s16.totalorder %v534_v43, 0  ;;  %v806_v60 = vld [vmem:[%s1492_s7 + $0x20] sm:$0xff] }
 0x17b   : > { %561 = vrot.lane.b32.xlu1 %v494_v6, %s1141_s25  ;;  %575 = vrot.lane.b32.xlu0 %v506_v7, %s1142_s26  ;;  %vm492_vm14 = vcmp.ne.s16.totalorder %v490_v11, 0  ;;  %v496_v28 = vsel %vm493_vm0, %v1329_v3, 0  ;;  %v542_v49 = vsel %vm539_vm12, %v1321_v62, 0  ;;  %vm567_vm0 = vcmask 1031168  }
 0x17c   : > { %v495_v21 = vsel %vm492_vm14, %v1327_v2, 0  ;;  %vm553_vm14 = vcmask 1039360  }
 0x17d   : > { %v500_v12 = vpop.permute.xlu1 %499 }
 0x17e   : > { %vm505_vm1 = vcmp.ne.s16.totalorder %v500_v12, 0  ;;  %v502_v24 = vsel %vm501_vm15, %v498_v0, %v500_v12  ;;  %v807_v0 = vld [vmem:[%s1492_s7 + $0x28] sm:$0xff] }
 0x17f   : > { %588 = vrot.lane.b32.xlu1 %v1327_v2, %s1139_s23  ;;  %590 = vrot.lane.b32.xlu0 %v1329_v3, %s1139_s23  ;;  %v508_v31 = vsel %vm505_vm1, %v1329_v3, 0  ;;  %vm504_vm3 = vcmp.ne.s16.totalorder %v502_v24, 0  ;;  %vm581_vm1 = vcmask 916480  }
 0x180   : > { %v507_v34 = vsel %vm504_vm3, %v1327_v2, 0  ;;  %vm606_vm3 = vcmask 900096  }
 0x181   : > { %v512_v22 = vpop.permute.xlu1 %511 }
 0x182   : > { %vm517_vm6 = vcmp.ne.s16.totalorder %v512_v22, 0  ;;  %v514_v35 = vsel %vm513_vm4, %v510_v16, %v512_v22  ;;  %vm620_vm4 = vcmask 785408  }
 0x183   : > { %600 = vrot.lane.b32.xlu0 %v518_v17, %s1143_s29  ;;  %563 = vrot.lane.b32.xlu1 %v495_v21, %s1141_s25  ;;  %v520_v39 = vsel %vm517_vm6, %v1329_v3, 0  ;;  %vm516_vm7 = vcmp.ne.s16.totalorder %v514_v35, 0  ;;  %vm645_vm6 = vcmask 769024  }
 0x184   : > { %v519_v41 = vsel %vm516_vm7, %v1327_v2, 0 }
 0x185   : > { %v524_v32 = vpop.permute.xlu1 %523 }
 0x186   : > { %v526_v38 = vsel %vm525_vm5, %v522_v25, %v524_v32  ;;  %vm529_vm10 = vcmp.ne.s16.totalorder %v524_v32, 0  ;;  %vm631_vm5 = vcmask 777216  }
 0x187   : > { %565 = vrot.lane.b32.xlu0 %v496_v28, %s1141_s25  ;;  %579 = vrot.lane.b32.xlu1 %v508_v31, %s1142_s26  ;;  %vm528_vm8 = vcmp.ne.s16.totalorder %v526_v38, 0  ;;  %v532_v46 = vsel %vm529_vm10, %v1329_v3, 0 }
 0x188   : > { %v531_v42 = vsel %vm528_vm8, %v1327_v2, 0 }
 0x189   : > { %v536_v40 = vpop.permute.xlu1 %535 }
 0x18a   : > { %v538_v44 = vsel %vm537_vm9, %v534_v43, %v536_v40  ;;  %vm541_vm13 = vcmp.ne.s16.totalorder %v536_v40, 0 }
 0x18b   : > { %614 = vrot.lane.b32.xlu1 %v530_v33, %s1144_s30  ;;  %577 = vrot.lane.b32.xlu0 %v507_v34, %s1142_s26  ;;  %vm540_vm11 = vcmp.ne.s16.totalorder %v538_v44, 0  ;;  %v544_v48 = vsel %vm541_vm13, %v1329_v3, 0 }
 0x18c   : > { %v543_v47 = vsel %vm540_vm11, %v1327_v2, 0 }
 0x18f   : > { %627 = vrot.lane.b32.xlu0 %v1327_v2, %s1145_s9  ;;  %604 = vrot.lane.b32.xlu1 %v520_v39, %s1143_s29  ;;  %v809_v2 = vld [vmem:[%s1492_s7 + $0x38] sm:$0xff] }
 0x193   : > { %602 = vrot.lane.b32.xlu0 %v519_v41, %s1143_s29  ;;  %616 = vrot.lane.b32.xlu1 %v531_v42, %s1144_s30 }
 0x197   : > { %618 = vrot.lane.b32.xlu0 %v532_v46, %s1144_s30  ;;  %629 = vrot.lane.b32.xlu1 %v1329_v3, %s1145_s9 }
 0x19b   : > { %625 = vrot.lane.b32.xlu0 %v1321_v62, %s1145_s9  ;;  %641 = vrot.lane.b32.xlu1 %v543_v47, %s1146_s13  ;;  %v803_v62 = vld [vmem:[%s1492_s7 + $0x8] sm:$0xff] }
 0x19f   : > { %643 = vrot.lane.b32.xlu0 %v544_v48, %s1146_s13  ;;  %639 = vrot.lane.b32.xlu1 %v542_v49, %s1146_s13 }
 0x1a3   : > { %660 = vperm.xlu0 %1111, %v654_v50   ;;  %665 = vperm.xlu1 %1112, %v655_v51  }
 0x1a7   : > { %670 = vperm.xlu0 %1111, %v656_v52   ;;  %675 = vperm.xlu1 %1112, %v657_v53  }
 0x1ab   : > { %776 = vperm.xlu0 %1111, %v772_v54   ;;  %781 = vperm.xlu1 %1112, %v773_v57  }
 0x1af   : > { %812 = vperm.xlu0 %1111, %v802_v58   ;;  %817 = vperm.xlu1 %1112, %v803_v62   ;;  %v1117_v62 = vld [vmem:[%s1487_s2 + $0x14] ss:$8 sps:$4 sm:$0xff]  }
 0x1b3   : > { %822 = vperm.xlu0 %1111, %v804_v59   ;;  %827 = vperm.xlu1 %1112, %v805_v63   ;;  %v1119_v63 = vld [vmem:[%s1487_s2 + $0x10] ss:$8 sps:$4 sm:$0xff]  }
 0x1b7   : > { %832 = vperm.xlu0 %1111, %v806_v60   ;;  %837 = vperm.xlu1 %1112, %v807_v0  }
 0x1bb   : > { %842 = vperm.xlu0 %1111, %v808_v61   ;;  %847 = vperm.xlu1 %1112, %v809_v2   ;;  %v1114_v61 = vld [vmem:[%s1487_s2] ss:$8 sps:$4 sm:$0xff]  }
 0x1e5   : > { %v548_v3 = vpop.permute.xlu0 %547  ;;  %v587_v4 = vpop.permute.xlu1 %586 }
 0x1e9   : > { %v550_v5 = vpop.permute.xlu0 %549  ;;  %v552_v6 = vpop.permute.xlu1 %551 }
 0x1ea   : > { %v555_v7 = vsel %vm553_vm14, %v550_v5, %v552_v6  ;;  %v554_v11 = vsel %vm553_vm14, %v548_v3, %v550_v5 }
 0x1eb   : > { %705 = vmatprep.subr.bf16.mxu1 %v555_v7 }
 0x1ec   : > { %706 = vmatpush1.bf16.msra.mxu1 %v554_v11 }
 0x1ed   : > { %v576_v12 = vpop.permute.xlu0 %575  ;;  %v562_v16 = vpop.permute.xlu1 %561 }
 0x1f1   : > { %v591_v17 = vpop.permute.xlu0 %590  ;;  %v589_v21 = vpop.permute.xlu1 %588 }
 0x1f2   : > { %v594_v39 = vsel %vm592_vm2, %v589_v21, %v591_v17  ;;  %v593_v42 = vsel %vm592_vm2, %v587_v4, %v589_v21 }
 0x1f5   : > { %v601_v22 = vpop.permute.xlu0 %600  ;;  %v564_v24 = vpop.permute.xlu1 %563 }
 0x1f6   : > { %v568_v32 = vsel %vm567_vm0, %v562_v16, %v564_v24 }
 0x1f9   : > { %v566_v25 = vpop.permute.xlu0 %565  ;;  %v580_v28 = vpop.permute.xlu1 %579 }
 0x1fa   : > { %v569_v31 = vsel %vm567_vm0, %v564_v24, %v566_v25 }
 0x1fb   : > { %707 = vmatprep.subr.bf16.mxu1 %v569_v31  ;;  %v770_v31 = vunpack.c.h.bf16 %v1311_v55 }
 0x1fc   : > { %708 = vmatpush1.bf16.msra.mxu1 %v568_v32 }
 0x1fd   : > { %v578_v33 = vpop.permute.xlu0 %577  ;;  %v615_v34 = vpop.permute.xlu1 %614 }
 0x1fe   : > { %v583_v35 = vsel %vm581_vm1, %v578_v33, %v580_v28  ;;  %v582_v38 = vsel %vm581_vm1, %v576_v12, %v578_v33  ;;  %v768_v28 = vunpack.c.l.bf16 %v1311_v55 }
 0x1ff   : > { %709 = vmatprep.subr.bf16.mxu1 %v583_v35  ;;  %v769_v35 = vunpack.c.l.bf16 %v1313_v56 }
 0x200   : > { %710 = vmatpush1.bf16.msra.mxu1 %v582_v38 }
 0x201   : > { %v628_v40 = vpop.permute.xlu0 %627  ;;  %711 = vmatprep.subr.bf16.mxu1 %v594_v39  ;;  %v605_v41 = vpop.permute.xlu1 %604 }
 0x204   : > { %712 = vmatpush1.bf16.msra.mxu1 %v593_v42  ;;  %v771_v42 = vunpack.c.h.bf16 %v1313_v56 }
 0x205   : > { %v603_v43 = vpop.permute.xlu0 %602  ;;  %v617_v44 = vpop.permute.xlu1 %616 }
 0x206   : > { %v608_v45 = vsel %vm606_vm3, %v603_v43, %v605_v41  ;;  %v607_v46 = vsel %vm606_vm3, %v601_v22, %v603_v43  ;;  %v621_v50 = vsel %vm620_vm4, %v615_v34, %v617_v44 }
 0x207   : > { %713 = vmatprep.subr.bf16.mxu1 %v608_v45 }
 0x208   : > { %714 = vmatpush1.bf16.msra.mxu1 %v607_v46 }
 0x209   : > { %v619_v47 = vpop.permute.xlu0 %618  ;;  %v630_v48 = vpop.permute.xlu1 %629 }
 0x20a   : > { %v622_v49 = vsel %vm620_vm4, %v617_v44, %v619_v47  ;;  %v633_v51 = vsel %vm631_vm5, %v628_v40, %v630_v48 }
 0x20b   : > { %715 = vmatprep.subr.bf16.mxu1 %v622_v49 }
 0x20c   : > { %716 = vmatpush1.bf16.msra.mxu1 %v621_v50 }
 0x20d   : > { %v626_v52 = vpop.permute.xlu0 %625  ;;  %717 = vmatprep.subr.bf16.mxu1 %v633_v51  ;;  %v642_v53 = vpop.permute.xlu1 %641 }
 0x20e   : > { %v632_v54 = vsel %vm631_vm5, %v626_v52, %v628_v40 }
 0x210   : > { %718 = vmatpush1.bf16.msra.mxu1 %v632_v54 }
 0x211   : > { %v644_v57 = vpop.permute.xlu0 %643  ;;  %v640_v58 = vpop.permute.xlu1 %639 }
 0x212   : > { %v647_v59 = vsel %vm645_vm6, %v642_v53, %v644_v57  ;;  %v646_v60 = vsel %vm645_vm6, %v640_v58, %v642_v53 }
 0x213   : > { %719 = vmatprep.subr.bf16.mxu1 %v647_v59 }
 0x214   : > { %720 = vmatpush1.bf16.msra.mxu1 %v646_v60 }
 0x217   : > { %736 = vmatmul.mubr.bf16.vlgmr.msra.gmra.mrb[0].mxu1 %v1114_v61 }
 0x218   : > { %1075 = vmatprep.mubr.msk.bf16.mxu1 %vm501_vm15, %v1117_v62 }
 0x21f   : > { %746 = vmatmul.mubr.bf16.gmra.mrb[4].mxu1 %v1119_v63 }
 0x222   : > { %v661_v0 = vpop.permute.xlu0 %660  ;;  %v666_v2 = vpop.permute.xlu1 %665 }
 0x226   : > { %v671_v7 = vpop.permute.xlu0 %670  ;;  %v676_v11 = vpop.permute.xlu1 %675 }
 0x22a   : > { %v777_v25 = vpop.permute.xlu0 %776  ;;  %v782_v43 = vpop.permute.xlu1 %781 }
 0x22b   : > { %v784_v47 = vmul.f32 %v777_v25, %v768_v28  ;;  %v785_v55 = vmul.f32 %v777_v25, %v769_v35  ;;  %v786_v54 = vmul.f32 %v782_v43, %v770_v31  ;;  %v787_v59 = vmul.f32 %v782_v43, %v771_v42 }
 0x2ea   : > { %v737_v3 = vpop.f32.mrb[0].mxu1 }
 0x2eb   : > { %v739_v4 = vpop.f32.mrb[1].mxu1  ;;  %v738_v12 = vadd.f32 %v737_v3, %v661_v0  ;;  %v1121_v3 = vld [vmem:[%s1488_s3 + $0x8] sm:$0xff]  }
 0x2ec   : > { %v741_v5 = vpop.f32.mrb[2].mxu1  ;;  %v740_v16 = vadd.f32 %v739_v4, %v661_v0  ;;  %v1122_v4 = vld [vmem:[%s1488_s3 + $0x10] sm:$0xff]  }
 0x2ed   : > { %v743_v6 = vpop.f32.mrb[3].mxu1  ;;  %v742_v21 = vadd.f32 %v741_v5, %v666_v2  ;;  %v756_v38 = vmax.f32 %v738_v12, 0.0  ;;  %v1123_v5 = vld [vmem:[%s1488_s3 + $0x18] sm:$0xff]  }
 0x2ee   : > { %v744_v32 = vadd.f32 %v743_v6, %v666_v2  ;;  %v757_v44 = vmax.f32 %v740_v16, 0.0  ;;  %v1120_v2 = vld [vmem:[%s1488_s3] sm:$0xff]   ;;  %v813_v6 = vpop.permute.xlu0 %812  ;;  %v818_v16 = vpop.permute.xlu1 %817 }
 0x2ef   : > { %v758_v48 = vmax.f32 %v742_v21, 0.0 }
 0x2f0   : > { %v759_v51 = vmax.f32 %v744_v32, 0.0 }
 0x2f2   : > { %v747_v17 = vpop.f32.mrb[4].mxu1  ;;  %v823_v35 = vpop.permute.xlu0 %822 }
 0x2f3   : > { %v748_v22 = vadd.f32 %v747_v17, %v671_v7  ;;  %v749_v24 = vpop.f32.mrb[5].mxu1  ;;  %v828_v42 = vpop.permute.xlu1 %827 }
 0x2f4   : > { %v750_v33 = vadd.f32 %v749_v24, %v671_v7  ;;  %v751_v34 = vpop.f32.mrb[6].mxu1 }
 0x2f5   : > { %v760_v39 = vmax.f32 %v748_v22, 0.0  ;;  %v752_v40 = vadd.f32 %v751_v34, %v676_v11  ;;  %v753_v41 = vpop.f32.mrb[7].mxu1 }
 0x2f6   : > { %v761_v45 = vmax.f32 %v750_v33, 0.0  ;;  %v754_v46 = vadd.f32 %v753_v41, %v676_v11 }
 0x2f7   : > { %v764_v49 = vadd.f32 %v760_v39, %v756_v38  ;;  %v762_v50 = vmax.f32 %v752_v40, 0.0 }
 0x2f8   : > { %v765_v52 = vadd.f32 %v761_v45, %v757_v44  ;;  %v763_v53 = vmax.f32 %v754_v46, 0.0 }
 0x2f9   : > { %v788_v57 = vadd.f32 %v784_v47, %v764_v49  ;;  %v766_v58 = vadd.f32 %v762_v50, %v758_v48 }
 0x2fa   : > { %v789_v60 = vadd.f32 %v785_v55, %v765_v52  ;;  %v767_v61 = vadd.f32 %v763_v53, %v759_v51  ;;  %v833_v51 = vpop.permute.xlu0 %832 }
 0x2fb   : > { %v790_v62 = vadd.f32 %v786_v54, %v766_v58 }
 0x2fc   : > { %v791_v56 = vadd.f32 %v787_v59, %v767_v61 }
 0x2fd   : > { %v800_v63 = vpack.c.bf16 %v790_v62, %v788_v57  ;;  %v838_v57 = vpop.permute.xlu1 %837 }
 0x2fe   : > { %v801_v0 = vpack.c.bf16 %v791_v56, %v789_v60 }
 0x300   : > { %882 = vmatprep.subr.bf16.mxu0 %v801_v0 }
 0x301   : > { %883 = vmatpush1.bf16.msra.mxu0 %v800_v63 }
 0x304   : > { %1080 = vmatmul.mubr.msk.bf16.vlgmr.msra.gmra.mrb[4].mxu0 %vm501_vm15, %v1120_v2 }
 0x305   : > { %924 = vmatprep.mubr.bf16.mxu0 %v1132_v1 }
 0x30c   : > { %1081 = vmatmul.mubr.msk.bf16.gmra.mrb[8].mxu0 %vm501_vm15, %v1121_v3  ;;  %v843_v3 = vpop.permute.xlu0 %842 }
 0x30d   : > { %934 = vmatprep.mubr.bf16.mxu0 %v1132_v1 }
 0x314   : > { %1082 = vmatmul.mubr.msk.bf16.gmra.mrb[12].mxu0 %vm501_vm15, %v1122_v4 }
 0x315   : > { %944 = vmatprep.mubr.bf16.mxu0 %v1132_v1 }
 0x31c   : > { %1083 = vmatmul.mubr.msk.bf16.gmra.mrb[16].mxu0 %vm501_vm15, %v1123_v5 }
 0x3d7   : > { %v916_v7 = vpop.f32.mrb[4].mxu0 }
 0x3d8   : > { %v917_v11 = vadd.f32 %v916_v7, %v813_v6  ;;  %v918_v12 = vpop.f32.mrb[5].mxu0 }
 0x3d9   : > { %v919_v17 = vadd.f32 %v918_v12, %v813_v6  ;;  %v920_v21 = vpop.f32.mrb[6].mxu0 }
 0x3da   : > { %v955_v22 = vadd.f32 %v917_v11, %v1228_v10  ;;  %v921_v24 = vadd.f32 %v920_v21, %v818_v16  ;;  %v922_v25 = vpop.f32.mrb[7].mxu0 }
 0x3db   : > { %v956_v1 = vadd.f32 %v919_v17, %v1222_v8  ;;  %v923_v28 = vadd.f32 %v922_v25, %v818_v16 }
 0x3dc   : > { %v971_v31 = vmax.f32 %v955_v22, 0.0  ;;  %v957_v32 = vadd.f32 %v921_v24, %v1233_v13 }
 0x3dd   : > { %v972_v33 = vmax.f32 %v956_v1, 0.0  ;;  %v958_v10 = vadd.f32 %v923_v28, %v1225_v9 }
 0x3de   : > { %987 = vst [vmem:[%s1449_s20] sm:$0xff] %v971_v31  ;;  %v973_v34 = vmax.f32 %v957_v32, 0.0 }
 0x3df   : > { %988 = vst [vmem:[%s1449_s20 + $0x8] sm:$0xff] %v972_v33  ;;  %v974_v38 = vmax.f32 %v958_v10, 0.0  ;;  %v926_v39 = vpop.f32.mrb[8].mxu0 }
 0x3e0   : > { %989 = vst [vmem:[%s1449_s20 + $0x10] sm:$0xff] %v973_v34  ;;  %v927_v40 = vadd.f32 %v926_v39, %v823_v35  ;;  %v928_v41 = vpop.f32.mrb[9].mxu0 }
 0x3e1   : > { %990 = vst [vmem:[%s1449_s20 + $0x18] sm:$0xff] %v974_v38  ;;  %v929_v8 = vadd.f32 %v928_v41, %v823_v35  ;;  %v930_v43 = vpop.f32.mrb[10].mxu0 }
 0x3e2   : > { %v959_v13 = vadd.f32 %v927_v40, %v1246_v18  ;;  %v931_v44 = vadd.f32 %v930_v43, %v828_v42  ;;  %v932_v9 = vpop.f32.mrb[11].mxu0 }
 0x3e3   : > { %v960_v45 = vadd.f32 %v929_v8, %v1236_v14  ;;  %v933_v46 = vadd.f32 %v932_v9, %v828_v42 }
 0x3e4   : > { %v975_v47 = vmax.f32 %v959_v13, 0.0  ;;  %v961_v48 = vadd.f32 %v931_v44, %v1249_v19 }
 0x3e5   : > { %v976_v49 = vmax.f32 %v960_v45, 0.0  ;;  %v962_v50 = vadd.f32 %v933_v46, %v1239_v15 }
 0x3e6   : > { %991 = vst [vmem:[%s1449_s20 + $0x20] sm:$0xff] %v975_v47  ;;  %v977_v55 = vmax.f32 %v961_v48, 0.0 }
 0x3e7   : > { %992 = vst [vmem:[%s1449_s20 + $0x28] sm:$0xff] %v976_v49  ;;  %v978_v52 = vmax.f32 %v962_v50, 0.0  ;;  %v936_v53 = vpop.f32.mrb[12].mxu0 }
 0x3e8   : > { %993 = vst [vmem:[%s1449_s20 + $0x30] sm:$0xff] %v977_v55  ;;  %v937_v18 = vadd.f32 %v936_v53, %v833_v51  ;;  %v938_v54 = vpop.f32.mrb[13].mxu0 }
 0x3e9   : > { %994 = vst [vmem:[%s1449_s20 + $0x38] sm:$0xff] %v978_v52  ;;  %v939_v14 = vadd.f32 %v938_v54, %v833_v51  ;;  %v940_v58 = vpop.f32.mrb[14].mxu0 }
 0x3ea   : > { %v963_v19 = vadd.f32 %v937_v18, %v1269_v26  ;;  %v941_v59 = vadd.f32 %v940_v58, %v838_v57  ;;  %v942_v15 = vpop.f32.mrb[15].mxu0 }
 0x3eb   : > { %v964_v60 = vadd.f32 %v939_v14, %v1252_v20  ;;  %v943_v61 = vadd.f32 %v942_v15, %v838_v57  ;;  %v848_v20 = vpop.permute.xlu1 %847 }
 0x3ec   : > { %v979_v62 = vmax.f32 %v963_v19, 0.0  ;;  %v965_v56 = vadd.f32 %v941_v59, %v1272_v27 }
 0x3ed   : > { %v980_v63 = vmax.f32 %v964_v60, 0.0  ;;  %v966_v0 = vadd.f32 %v943_v61, %v1263_v23 }
 0x3ee   : > { %995 = vst [vmem:[%s1449_s20 + $0x40] sm:$0xff] %v979_v62  ;;  %v981_v2 = vmax.f32 %v965_v56, 0.0 }
 0x3ef   : > { %996 = vst [vmem:[%s1449_s20 + $0x48] sm:$0xff] %v980_v63  ;;  %v982_v4 = vmax.f32 %v966_v0, 0.0  ;;  %v946_v5 = vpop.f32.mrb[16].mxu0 }
 0x3f0   : > { %997 = vst [vmem:[%s1449_s20 + $0x50] sm:$0xff] %v981_v2  ;;  %v947_v26 = vadd.f32 %v946_v5, %v843_v3  ;;  %v948_v6 = vpop.f32.mrb[17].mxu0 }
 0x3f1   : > { %998 = vst [vmem:[%s1449_s20 + $0x58] sm:$0xff] %v982_v4  ;;  %v949_v7 = vadd.f32 %v948_v6, %v843_v3  ;;  %v950_v27 = vpop.f32.mrb[18].mxu0 }
 0x3f2   : > { %v967_v11 = vadd.f32 %v947_v26, %v1293_v36  ;;  %v951_v23 = vadd.f32 %v950_v27, %v848_v20  ;;  %v952_v12 = vpop.f32.mrb[19].mxu0 }
 0x3f3   : > { %v968_v16 = vadd.f32 %v949_v7, %v1277_v29  ;;  %v953_v17 = vadd.f32 %v952_v12, %v848_v20 }
 0x3f4   : > { %v983_v21 = vmax.f32 %v967_v11, 0.0  ;;  %v969_v22 = vadd.f32 %v951_v23, %v1296_v37 }
 0x3f5   : > { %v984_v24 = vmax.f32 %v968_v16, 0.0  ;;  %v970_v25 = vadd.f32 %v953_v17, %v1284_v30 }
 0x3f6   : > { %999 = vst [vmem:[%s1449_s20 + $0x60] sm:$0xff] %v983_v21  ;;  %v985_v1 = vmax.f32 %v969_v22, 0.0 }
 0x3f7   : > { %1000 = vst [vmem:[%s1449_s20 + $0x68] sm:$0xff] %v984_v24  ;;  %v986_v28 = vmax.f32 %v970_v25, 0.0 }
 0x3f8   : > { %1001 = vst [vmem:[%s1449_s20 + $0x70] sm:$0xff] %v985_v1 }
 0x3f9   : > { %1002 = vst [vmem:[%s1449_s20 + $0x78] sm:$0xff] %v986_v28 }
 0x3fa PF: > { %s18_s27 = sadd.s32 1, %s1130_s27  }
 0x3fb   : > { %p15_p4 = scmp.ge.s32.totalorder %s18_s27, 4  }
 0x3fd   :  { %17 = sbr.rel (!%p15_p4) target bundleno = 1 (0x1), region = 82 }

</bundles_post_ra>
